<compile_context>
chip_gen: v7x
topology: tpu7x:2x2x1
jax: 0.10.0
libtpu: 0.0.40
codegen_flags: <defaults>
</compile_context>

<pallas_src>
import math

import jax
import jax.numpy as jnp
from jax.experimental import pallas as pl
from jax.experimental.pallas import tpu as pltpu


def _outconv_kernel(w_ref, b_ref, x_ref, o_ref):
    # w_ref: (C_out, C_in)   VMEM, resident across grid steps
    # b_ref: (C_out, 1)      VMEM, resident across grid steps
    # x_ref: (1, C_in, TL)   VMEM, streamed
    # o_ref: (1, C_out, TL)  VMEM, streamed
    c_in = x_ref.shape[1]
    x = x_ref[0].astype(jnp.float32)        # (C_in, TL), lane-dense
    w = w_ref[...].astype(jnp.float32)      # (C_out, C_in)

    # y[o, l] = sum_c w[o, c] * x[c, l] -- unrolled VPU FMAs via broadcasts:
    # (C_out, 1) broadcast across lanes, (1, TL) broadcast across sublanes.
    acc = w[:, 0:1] * x[0:1, :]
    for c in range(1, c_in):
        acc = acc + w[:, c:c + 1] * x[c:c + 1, :]
    acc = acc + b_ref[...]                  # bias add, (C_out, 1) broadcast
    o_ref[0] = jnp.clip(acc, 0.0, 1.0).astype(o_ref.dtype)


def _choose_tile_l(length):
    """Lane-dense tile along L: largest power-of-two multiple of 128 dividing L
    (capped at 32768); full extent when L is not a multiple of 128 (a block dim
    equal to the array dim is always legal)."""
    if length % 128 != 0:
        return length
    return math.gcd(length, 32768)


def out_conv(x, weight, bias, *, tile_l=None):
    """clamp(conv1d(x, weight, bias), 0, 1) with kernel_size=1, NCL layout.

    x: (N, C_in, L); weight: (C_out, C_in, 1); bias: (C_out,).
    Returns (N, C_out, L).
    """
    N, C_in, L = x.shape
    C_out = weight.shape[0]

    w2d = weight[:, :, 0]             # (C_out, C_in) -- trivial squeeze, no transpose
    b2d = bias.reshape(C_out, 1)      # (C_out, 1)

    tl = _choose_tile_l(L) if tile_l is None else tile_l
    assert L % tl == 0, "tile_l must divide L"
    grid = (N, L // tl)

    itemsize = x.dtype.itemsize
    flops = 2 * N * L * C_in * C_out
    bytes_accessed = (N * C_in * L + N * C_out * L) * itemsize \
        + w2d.size * w2d.dtype.itemsize + C_out * bias.dtype.itemsize

    return pl.pallas_call(
        _outconv_kernel,
        out_shape=jax.ShapeDtypeStruct((N, C_out, L), x.dtype),
        grid_spec=pltpu.PrefetchScalarGridSpec(
            num_scalar_prefetch=0,
            grid=grid,
            in_specs=[
                pl.BlockSpec((C_out, C_in), lambda n, l: (0, 0)),    # resident
                pl.BlockSpec((C_out, 1), lambda n, l: (0, 0)),       # resident
                pl.BlockSpec((1, C_in, tl), lambda n, l: (n, 0, l)),
            ],
            out_specs=pl.BlockSpec((1, C_out, tl), lambda n, l: (n, 0, l)),
        ),
        compiler_params=pltpu.CompilerParams(
            dimension_semantics=("parallel", "parallel")),
        cost_estimate=pl.CostEstimate(
            flops=flops, transcendentals=0, bytes_accessed=bytes_accessed),
    )(w2d, b2d, x)


if __name__ == "__main__":
    key = jax.random.PRNGKey(0)
    kx, kw, kb, kx2 = jax.random.split(key, 4)

    # Small shapes consistent with the module (Conv1d input is (N, C_in, L)).
    N, C_in, C_out, L = 2, 4, 3, 16
    x = jax.random.normal(kx, (N, C_in, L), dtype=jnp.float32)

    # PyTorch Conv1d default init: U(-k, k), k = 1/sqrt(C_in * kernel_size).
    k = 1.0 / jnp.sqrt(C_in * 1.0)
    weight = jax.random.uniform(kw, (C_out, C_in, 1), minval=-k, maxval=k,
                                dtype=jnp.float32)
    bias = jax.random.uniform(kb, (C_out,), minval=-k, maxval=k,
                              dtype=jnp.float32)

    def ref_fn(xx):
        r = jnp.einsum('oc,ncl->nol', weight[:, :, 0], xx) + bias[None, :, None]
        return jnp.clip(r, 0.0, 1.0)

    # 1) Tiny shape: full-extent L block.
    out = jax.block_until_ready(out_conv(x, weight, bias))
    assert out.shape == (N, C_out, L)
    assert jnp.allclose(out, ref_fn(x), atol=1e-5, rtol=1e-5)

    # 2) Larger L exercising the multi-step lane-tiled pipeline (grid=(N, 4)).
    L2 = 512
    x2 = jax.random.normal(kx2, (N, C_in, L2), dtype=jnp.float32)
    out2 = jax.block_until_ready(out_conv(x2, weight, bias, tile_l=128))
    assert out2.shape == (N, C_out, L2)
    assert jnp.allclose(out2, ref_fn(x2), atol=1e-5, rtol=1e-5)

    print("KERNEL_OK")
</pallas_src>

<mosaic_0001>
module attributes {stable_mosaic.version = 11 : i64} {
  func.func @_outconv_kernel(%arg0: i32, %arg1: i32, %arg2: memref<3x4xf32, #tpu.memory_space<vmem>>, %arg3: memref<3x1xf32, #tpu.memory_space<vmem>>, %arg4: memref<1x4x16xf32, #tpu.memory_space<vmem>>, %arg5: memref<1x3x16xf32, #tpu.memory_space<vmem>>) attributes {dimension_semantics = [#tpu.dimension_semantics<parallel>, #tpu.dimension_semantics<parallel>], iteration_bounds = array<i64: 2, 1>, scalar_prefetch = 0 : i64, scratch_operands = 0 : i64, tpu.core_type = #tpu.core_type<tc>, window_params = [{pipeline_mode = #tpu.pipeline_mode<synchronous>, transform_indices = @transform_0, window_bounds = array<i64: 3, 4>}, {pipeline_mode = #tpu.pipeline_mode<synchronous>, transform_indices = @transform_1, window_bounds = array<i64: 3, 1>}, {transform_indices = @transform_2, window_bounds = array<i64: 1, 4, 16>}, {transform_indices = @transform_3, window_bounds = array<i64: 1, 3, 16>}]} {
    %c0 = arith.constant 0 : index
    %c0_0 = arith.constant 0 : index
    %c0_1 = arith.constant 0 : index
    %0 = vector.load %arg4[%c0, %c0_0, %c0_1] : memref<1x4x16xf32, #tpu.memory_space<vmem>>, vector<1x4x16xf32>
    %1 = vector.shape_cast %0 : vector<1x4x16xf32> to vector<4x16xf32>
    %c0_2 = arith.constant 0 : index
    %c0_3 = arith.constant 0 : index
    %2 = vector.load %arg2[%c0_2, %c0_3] : memref<3x4xf32, #tpu.memory_space<vmem>>, vector<3x4xf32>
    %3 = vector.extract_strided_slice %2 {offsets = [0, 0], sizes = [3, 1], strides = [1, 1]} : vector<3x4xf32> to vector<3x1xf32>
    %4 = vector.extract_strided_slice %1 {offsets = [0, 0], sizes = [1, 16], strides = [1, 1]} : vector<4x16xf32> to vector<1x16xf32>
    %5 = vector.broadcast %3 : vector<3x1xf32> to vector<3x16xf32>
    %6 = vector.broadcast %4 : vector<1x16xf32> to vector<3x16xf32>
    %7 = arith.mulf %5, %6 : vector<3x16xf32>
    %8 = vector.extract_strided_slice %2 {offsets = [0, 1], sizes = [3, 1], strides = [1, 1]} : vector<3x4xf32> to vector<3x1xf32>
    %9 = vector.extract_strided_slice %1 {offsets = [1, 0], sizes = [1, 16], strides = [1, 1]} : vector<4x16xf32> to vector<1x16xf32>
    %10 = vector.broadcast %8 : vector<3x1xf32> to vector<3x16xf32>
    %11 = vector.broadcast %9 : vector<1x16xf32> to vector<3x16xf32>
    %12 = arith.mulf %10, %11 : vector<3x16xf32>
    %13 = arith.addf %7, %12 : vector<3x16xf32>
    %14 = vector.extract_strided_slice %2 {offsets = [0, 2], sizes = [3, 1], strides = [1, 1]} : vector<3x4xf32> to vector<3x1xf32>
    %15 = vector.extract_strided_slice %1 {offsets = [2, 0], sizes = [1, 16], strides = [1, 1]} : vector<4x16xf32> to vector<1x16xf32>
    %16 = vector.broadcast %14 : vector<3x1xf32> to vector<3x16xf32>
    %17 = vector.broadcast %15 : vector<1x16xf32> to vector<3x16xf32>
    %18 = arith.mulf %16, %17 : vector<3x16xf32>
    %19 = arith.addf %13, %18 : vector<3x16xf32>
    %20 = vector.extract_strided_slice %2 {offsets = [0, 3], sizes = [3, 1], strides = [1, 1]} : vector<3x4xf32> to vector<3x1xf32>
    %21 = vector.extract_strided_slice %1 {offsets = [3, 0], sizes = [1, 16], strides = [1, 1]} : vector<4x16xf32> to vector<1x16xf32>
    %22 = vector.broadcast %20 : vector<3x1xf32> to vector<3x16xf32>
    %23 = vector.broadcast %21 : vector<1x16xf32> to vector<3x16xf32>
    %24 = arith.mulf %22, %23 : vector<3x16xf32>
    %25 = arith.addf %19, %24 : vector<3x16xf32>
    %c0_4 = arith.constant 0 : index
    %c0_5 = arith.constant 0 : index
    %26 = vector.load %arg3[%c0_4, %c0_5] : memref<3x1xf32, #tpu.memory_space<vmem>>, vector<3x1xf32>
    %27 = vector.broadcast %26 : vector<3x1xf32> to vector<3x16xf32>
    %28 = arith.addf %25, %27 : vector<3x16xf32>
    %cst = arith.constant 0.000000e+00 : f32
    %cst_6 = arith.constant 1.000000e+00 : f32
    %29 = vector.broadcast %cst : f32 to vector<3x16xf32>
    %30 = arith.maximumf %29, %28 : vector<3x16xf32>
    %31 = vector.broadcast %cst_6 : f32 to vector<3x16xf32>
    %32 = arith.minimumf %31, %30 : vector<3x16xf32>
    %c0_7 = arith.constant 0 : index
    %c0_8 = arith.constant 0 : index
    %c0_9 = arith.constant 0 : index
    %33 = vector.load %arg5[%c0_7, %c0_8, %c0_9] : memref<1x3x16xf32, #tpu.memory_space<vmem>>, vector<1x3x16xf32>
    %34 = vector.shape_cast %33 : vector<1x3x16xf32> to vector<3x16xf32>
    %35 = vector.shape_cast %32 : vector<3x16xf32> to vector<1x3x16xf32>
    tpu.vector_store %arg5[%c0_7, %c0_8, %c0_9], %35 {strides = array<i32>} : memref<1x3x16xf32, #tpu.memory_space<vmem>>, vector<1x3x16xf32>,
    return
  }
  func.func @transform_0(%arg0: i32, %arg1: i32) -> (i32, i32) {
    %c0_i32 = arith.constant 0 : i32
    %c0_i32_0 = arith.constant 0 : i32
    %c0_i32_1 = arith.constant 0 : i32
    return %c0_i32, %c0_i32_0 : i32, i32
  }
  func.func @transform_1(%arg0: i32, %arg1: i32) -> (i32, i32) {
    %c0_i32 = arith.constant 0 : i32
    %c0_i32_0 = arith.constant 0 : i32
    %c0_i32_1 = arith.constant 0 : i32
    return %c0_i32, %c0_i32_0 : i32, i32
  }
  func.func @transform_2(%arg0: i32, %arg1: i32) -> (i32, i32, i32) {
    %c0_i32 = arith.constant 0 : i32
    %c0_i32_0 = arith.constant 0 : i32
    return %arg0, %c0_i32, %arg1 : i32, i32, i32
  }
  func.func @transform_3(%arg0: i32, %arg1: i32) -> (i32, i32, i32) {
    %c0_i32 = arith.constant 0 : i32
    %c0_i32_0 = arith.constant 0 : i32
    return %arg0, %c0_i32, %arg1 : i32, i32, i32
  }
}

</mosaic_0001>

<bundles_post_ra>
// kernel: tpu_custom_call.1
= control target key start
LH: loop header
LB: loop body
LE: loop exit
PB: predicated region body
PF: predicated region fallthrough
CT: control target
= control target key end

     0   :  { %s415_s12 = smov 0   ;;  %s417_s13 = smov 0   ;;  %s457_s0 = inlined_call_operand.vmem [shape: f32[3,4], index: 0, kind: input, shape index: {}]   ;;  %s458_s1 = inlined_call_operand.vmem [shape: f32[3,1], index: 1, kind: input, shape index: {}]   ;;  %s459_s2 = inlined_call_operand.vmem [shape: f32[2,4,16], index: 2, kind: input, shape index: {}]   ;;  %s460_s3 = inlined_call_operand.vmem [shape: f32[2,3,16], index: 3, kind: output, shape index: {}]  }
   0x1   :  { %s419_s14 = smov 0  }
   0x2 LB: > { %s25_s15 = sadd.s32 1, %s385_s13  ;;  %p328_p0 = scmp.ge.s32.totalorder %s389_s14, 1  ;;  %s389_s14 = sphi %s419_s14, %s13_s14   ;;  %s385_s13 = sphi %s417_s13, %s462_s13   ;;  %s381_s12 = sphi %s415_s12, %s461_s12  }
   0x3   : > { %p27_p1 = scmp.ge.s32.totalorder %s25_s15, 2  ;;  %p155_p2 = scmp.lt.s32.totalorder %s389_s14, 3 }
   0x5   : > { %s464_s15 = smov (%p27_p1, %s25_s15), 0  ;;  %p156_p3 = pnand %p328_p0, %p155_p2 }
   0x6   : > { %v198_v0 = vld [vmem:[%s457_s0] sm:$0x7] (!%p156_p3)  ;;  %v391_v1 = vmov (!%p156_p3), 0   ;;  %v392_v2 = vmov (!%p156_p3), 2   ;;  %v393_v3 = vmov (!%p156_p3), 1   ;;  %v394_v4 = vmov (!%p156_p3), 3  }
   0x7   : > { %159 = sbr.rel (%p156_p3) target bundleno = 156 (0x9c), region = 32  ;;  %361 = vset.pattern.permute.xlu0 (!%p156_p3), %v391_v1  ;;  %363 = vset.pattern.permute.xlu1 (!%p156_p3), %v392_v2  ;;  %v239_v5 = vld [vmem:[%s458_s1] sm:$0x7] (!%p156_p3)  ;;  %p183_p4 = scmp.lt.s32.totalorder (!%p156_p3), %s381_s12, 1  ;;  %v204_v6 = vlaneseq (!%p156_p3)  ;;  %vm248_vm0 = vcmask (!%p156_p3), 124928  }
   0x8   : > { %201 = vperm.xlu0 (!%p156_p3), %361, %v198_v0   ;;  %220 = vperm.xlu1 (!%p156_p3), %363, %v198_v0  }
   0x9   : > { %v205_v7 = vshrl.u32 (!%p156_p3), %v204_v6, 7 }
   0xb   : > { %v206_v8 = vsub.s32 (!%p156_p3), 0, %v205_v7  ;;  %v215_v9 = vsub.s32 (!%p156_p3), 1, %v205_v7  ;;  %v225_v12 = vsub.s32 (!%p156_p3), 2, %v205_v7  ;;  %v235_v14 = vsub.s32 (!%p156_p3), 3, %v205_v7 }
   0xc   : > { %362 = vset.pattern.permute.xlu0 (!%p156_p3), %v393_v3  ;;  %364 = vset.pattern.permute.xlu1 (!%p156_p3), %v394_v4 }
   0xd   : > { %210 = vperm.xlu0 (!%p156_p3), %362, %v198_v0   ;;  %230 = vperm.xlu1 (!%p156_p3), %364, %v198_v0  }
   0xe   : > { %s466_s12 = smov (!%p183_p4, %s381_s12), 1 }
   0xf   : > { %s329_s20 = sshll.u32 %s466_s12, 2 }
  0x10   : > { %s189_s23 = scalar_lea.vmem %s459_s2, %s329_s20  ;;  %s196_s26 = scalar_lea.vmem %s460_s3, %s329_s20 }
  0x11   : > { %365 = vset.pattern.permute.xlu1 %v391_v1  ;;  %366 = vset.pattern.permute.xlu0 %v391_v1  ;;  %v197_v10 = vld [vmem:[%s189_s23] sm:$0xf] }
  0x12   : > { %242 = vperm.xlu1 %365, %v239_v5   ;;  %v207_v15 = vrot.slane %v197_v10, %v206_v8  ;;  %v216_v16 = vrot.slane %v197_v10, %v215_v9  ;;  %v226_v17 = vrot.slane %v197_v10, %v225_v12  ;;  %v236_v18 = vrot.slane %v197_v10, %v235_v14 }
  0x87   : > { %v202_v11 = vpop.permute.xlu0 %201  ;;  %v221_v13 = vpop.permute.xlu1 %220 }
  0x88   : > { %v208_v21 = vmul.f32 %v207_v15, %v202_v11  ;;  %v227_v23 = vmul.f32 %v226_v17, %v221_v13 }
  0x8c   : > { %v211_v19 = vpop.permute.xlu0 %210  ;;  %v231_v20 = vpop.permute.xlu1 %230 }
  0x8d   : > { %v217_v22 = vmul.f32 %v216_v16, %v211_v19  ;;  %v237_v25 = vmul.f32 %v236_v18, %v231_v20 }
  0x8f   : > { %v218_v24 = vadd.f32 %v217_v22, %v208_v21 }
  0x91   : > { %v228_v26 = vadd.f32 %v227_v23, %v218_v24  ;;  %v243_v27 = vpop.permute.xlu1 %242 }
  0x93   : > { %v238_v28 = vadd.f32 %v237_v25, %v228_v26 }
  0x95   : > { %v245_v29 = vadd.f32 %v243_v27, %v238_v28 }
  0x97   : > { %v246_v30 = vmax.f32 %v245_v29, 0.0 }
  0x99   : > { %v247_v31 = vmin.f32 %v246_v30, 1.0 }
  0x9b   : > { %249 = vst.msk [vmem:[%s196_s26] sm:$0x7] %vm248_vm0, %v247_v31 }
  0x9c PF: > { %s13_s14 = sadd.s32 1, %s389_s14   ;;  %s461_s12 = smov %s385_s13 }
  0x9d   : > { %p10_p5 = scmp.ge.s32.totalorder %s13_s14, 4   ;;  %s462_s13 = smov %s464_s15 }
  0x9f   :  { %12 = sbr.rel (!%p10_p5) target bundleno = 2 (0x2), region = 62 }

</bundles_post_ra>
